<compile_context>
chip_gen: v6e
topology: v6e:2x2x1
jax: 0.10.0
libtpu: 0.0.40
codegen_flags: <defaults>
</compile_context>

<pallas_src>
import functools

import jax
import jax.numpy as jnp
from jax.experimental import pallas as pl
from jax.experimental.pallas import tpu as pltpu


def _round_up(x, m):
    return (x + m - 1) // m * m


def _fused_gnn_kernel(dims, dims_p, n_layers, h_ref, adj_ref, *rest):
    # h_ref:   (Bt, Np, Dp0)   bf16 zero-padded features
    # adj_ref: (Bt, Np, Np)    bf16 zero-padded adjacency
    # rest = [w_0..w_{L-1}, p_0..p_{L-1}, o_ref]
    #   w_l: (din_p_l, dout_p_l) bf16 zero-padded weight
    #   p_l: (3, dout_p_l)       f32  rows = (bias, ln_gamma, ln_beta), zero-padded
    # o_ref:  (Bt, Np, DpL)     f32
    w_refs = rest[:n_layers]
    lnp_refs = rest[n_layers:2 * n_layers]
    o_ref = rest[2 * n_layers]

    Bt, Np, _ = h_ref.shape

    # Hoist lane masks out of the unrolled loop (one per distinct (dout, dout_p)).
    masks = {}
    for l in range(n_layers):
        dout, dout_p = dims[l + 1], dims_p[l + 1]
        if dout != dout_p and (dout, dout_p) not in masks:
            lane = jax.lax.broadcasted_iota(jnp.int32, (1, 1, dout_p), 2)
            masks[(dout, dout_p)] = lane < dout

    h = h_ref[...]                                   # bf16 (Bt, Np, Dp0)

    for l in range(n_layers):                        # static unroll over layers
        din_p = dims_p[l]
        dout, dout_p = dims[l + 1], dims_p[l + 1]

        # support = h @ W : fold batch into the MXU M dimension (f32 accumulation).
        support = jnp.dot(
            h.reshape(Bt * Np, din_p).astype(jnp.bfloat16),
            w_refs[l][...],
            preferred_element_type=jnp.float32,
        ).astype(jnp.bfloat16).reshape(Bt, Np, dout_p)

        lnp = lnp_refs[l][...]                       # (3, dout_p) f32
        bias = lnp[0:1, :]
        gamma = lnp[1:2, :]
        beta = lnp[2:3, :]

        # out = adj @ support + bias  (batched MXU matmul, f32 accumulation).
        out = jnp.einsum(
            "bnm,bmd->bnd", adj_ref[...], support,
            preferred_element_type=jnp.float32,
        ) + bias

        # LayerNorm over the TRUE feature width. Padded lanes of `out` are exact zeros
        # (zero-padded W columns and bias), so the un-masked mean is exact.
        inv_d = 1.0 / float(dout)
        mean = jnp.sum(out, axis=-1, keepdims=True) * inv_d
        centered = out - mean
        if dout != dout_p:
            centered = jnp.where(masks[(dout, dout_p)], centered, 0.0)
        var = jnp.sum(centered * centered, axis=-1, keepdims=True) * inv_d
        h = centered * jax.lax.rsqrt(var + 1e-5) * gamma + beta
        # padded lanes of h -> 0 again (gamma/beta padded with 0): keeps the next
        # layer's matmul over padded input lanes exact.

        if l < n_layers - 1:
            h = jnp.maximum(h, 0.0)                  # ReLU (+dropout == identity, eval)

    o_ref[...] = h.astype(o_ref.dtype)


def _vmem_budget_bytes():
    cap = None
    try:
        info = pltpu.get_tpu_info()
        cap = int(getattr(info, "vmem_capacity_bytes"))
    except Exception:
        cap = None
    if not cap or cap <= 0:
        cap = 64 * 1024 * 1024          # conservative fallback: v7x per-TC VMEM
    return int(cap * 0.75)              # headroom for compiler-internal scratch


def user_gnn_forward(features, adj, params, *, batch_block=None, out_dtype=jnp.float32):
    """features: (B, N, Din) f32, adj: (B, N, N), params: list of (W, b, gamma, beta)."""
    B, N, Din = features.shape
    n_layers = len(params)
    dims = [Din] + [w.shape[1] for (w, _, _, _) in params]
    dims_p = [_round_up(d, 128) for d in dims]       # per-layer lane-aligned widths
    Dout, DpL = dims[-1], dims_p[-1]
    Np = _round_up(N, 16)                            # sublane-aligned (bf16-safe)

    # Per-layer zero-padded weights (bf16) and packed LN params (3, dout_p).
    w_list, p_list = [], []
    for l, (w, b, gamma, beta) in enumerate(params):
        din, dout = w.shape
        din_p, dout_p = dims_p[l], dims_p[l + 1]
        wp = jnp.zeros((din_p, dout_p), jnp.bfloat16).at[:din, :dout].set(
            w.astype(jnp.bfloat16))
        pp = jnp.zeros((3, dout_p), jnp.float32)
        pp = pp.at[0, :dout].set(b.astype(jnp.float32))
        pp = pp.at[1, :dout].set(gamma.astype(jnp.float32))
        pp = pp.at[2, :dout].set(beta.astype(jnp.float32))
        w_list.append(wp)
        p_list.append(pp)

    # Features and adjacency stored bf16 (MXU operands); zero padding preserves results.
    feat_p = jnp.zeros((B, Np, dims_p[0]), jnp.bfloat16).at[:, :N, :Din].set(
        features.astype(jnp.bfloat16))
    adj_p = jnp.zeros((B, Np, Np), jnp.bfloat16).at[:, :N, :N].set(
        adj.astype(jnp.bfloat16))

    param_bytes = sum(int(wp.size) * 2 for wp in w_list) + \
        sum(int(pp.size) * 4 for pp in p_list)
    dmax_p = max(dims_p)

    def working_set(bt):
        feat_blk = bt * Np * dims_p[0] * 2           # bf16
        adj_blk = bt * Np * Np * 2                   # bf16
        out_blk = bt * Np * DpL * 4                  # f32
        live = bt * Np * dmax_p * 12                 # f32 h + f32 out + bf16 support
        # feat/adj/out blocks and params are double-buffered by the pipeline.
        return 2 * (feat_blk + adj_blk + out_blk + param_bytes) + live

    budget = _vmem_budget_bytes()

    if batch_block is None:
        batch_block = 1
        for d in sorted((d for d in range(1, B + 1) if B % d == 0), reverse=True):
            if B >= 2 and d == B:
                continue                             # keep grid >= 2 (dual-TC chips)
            if working_set(d) <= budget:
                batch_block = d
                break
    Bt = batch_block
    assert B % Bt == 0, "batch_block must divide the batch size"
    grid = (B // Bt,)

    vmem_limit = int(min(budget, max(32 * 1024 * 1024, int(working_set(Bt) * 1.25))))

    in_specs = [
        pl.BlockSpec((Bt, Np, dims_p[0]), lambda i: (i, 0, 0)),
        pl.BlockSpec((Bt, Np, Np), lambda i: (i, 0, 0)),
    ]
    # Grid-invariant per-layer weights / LN params: constant index_map -> fetched once.
    for l in range(n_layers):
        in_specs.append(pl.BlockSpec((dims_p[l], dims_p[l + 1]), lambda i: (0, 0)))
    for l in range(n_layers):
        in_specs.append(pl.BlockSpec((3, dims_p[l + 1]), lambda i: (0, 0)))

    kernel = functools.partial(_fused_gnn_kernel, tuple(dims), tuple(dims_p), n_layers)

    out_p = pl.pallas_call(
        kernel,
        out_shape=jax.ShapeDtypeStruct((B, Np, DpL), out_dtype),
        grid_spec=pltpu.PrefetchScalarGridSpec(
            num_scalar_prefetch=0,
            grid=grid,
            in_specs=in_specs,
            out_specs=pl.BlockSpec((Bt, Np, DpL), lambda i: (i, 0, 0)),
        ),
        compiler_params=pltpu.CompilerParams(
            dimension_semantics=("parallel",),
            vmem_limit_bytes=vmem_limit,
        ),
    )(feat_p, adj_p, *w_list, *p_list)

    return out_p[:, :N, :Dout]


def init_user_gnn_params(key, input_dim, hidden_dim, output_dim, n_layers):
    """Deterministic init matching GNNLayer.reset_parameters + LayerNorm defaults."""
    dims = [input_dim] + [hidden_dim] * (n_layers - 1) + [output_dim]
    params = []
    for li in range(n_layers):
        din, dout = dims[li], dims[li + 1]
        key, kw, kb = jax.random.split(key, 3)
        stdv = 1.0 / jnp.sqrt(jnp.float32(dout))
        w = jax.random.uniform(kw, (din, dout), jnp.float32, -stdv, stdv)
        b = jax.random.uniform(kb, (dout,), jnp.float32, -stdv, stdv)
        gamma = jnp.ones((dout,), jnp.float32)   # LayerNorm weight default
        beta = jnp.zeros((dout,), jnp.float32)   # LayerNorm bias default
        params.append((w, b, gamma, beta))
    return params


if __name__ == "__main__":
    B, N = 2, 16
    input_dim, hidden_dim, output_dim = 16, 32, 24
    n_layers = 3

    key = jax.random.PRNGKey(0)
    key, kf, ka = jax.random.split(key, 3)
    features = jax.random.normal(kf, (B, N, input_dim), jnp.float32)
    adj_raw = jax.random.uniform(ka, (B, N, N), jnp.float32)
    # symmetric row-normalized adjacency (typical GCN input)
    adj_sym = 0.5 * (adj_raw + jnp.swapaxes(adj_raw, 1, 2))
    adj = adj_sym / jnp.sum(adj_sym, axis=-1, keepdims=True)

    params = init_user_gnn_params(key, input_dim, hidden_dim, output_dim, n_layers)

    out = user_gnn_forward(features, adj, params)
    jax.block_until_ready(out)
    assert out.shape == (B, N, output_dim)

    # Pure-JAX reference applying the SAME bf16 matmul-operand casts as the kernel.
    adj_bf = adj.astype(jnp.bfloat16)
    h_ref = features
    for i, (w, b, gamma, beta) in enumerate(params):
        support = jnp.einsum(
            "bnd,do->bno", h_ref.astype(jnp.bfloat16), w.astype(jnp.bfloat16),
            preferred_element_type=jnp.float32).astype(jnp.bfloat16)
        o = jnp.einsum(
            "bnm,bmo->bno", adj_bf, support,
            preferred_element_type=jnp.float32) + b
        mu = jnp.mean(o, axis=-1, keepdims=True)
        var = jnp.mean((o - mu) ** 2, axis=-1, keepdims=True)
        o = (o - mu) * jax.lax.rsqrt(var + 1e-5) * gamma + beta
        if i < n_layers - 1:
            o = jnp.maximum(o, 0.0)
        h_ref = o

    assert jnp.allclose(out, h_ref, atol=1e-2, rtol=1e-2), (
        "mismatch vs reference, max abs diff = %g"
        % float(jnp.max(jnp.abs(out - h_ref))))

    print("KERNEL_OK")
</pallas_src>

<mosaic_0001>
module attributes {stable_mosaic.version = 11 : i64} {
  func.func @_fused_gnn_kernel(%arg0: i32, %arg1: memref<1x16x128xbf16, #tpu.memory_space<vmem>>, %arg2: memref<1x16x16xbf16, #tpu.memory_space<vmem>>, %arg3: memref<128x128xbf16, #tpu.memory_space<vmem>>, %arg4: memref<128x128xbf16, #tpu.memory_space<vmem>>, %arg5: memref<128x128xbf16, #tpu.memory_space<vmem>>, %arg6: memref<3x128xf32, #tpu.memory_space<vmem>>, %arg7: memref<3x128xf32, #tpu.memory_space<vmem>>, %arg8: memref<3x128xf32, #tpu.memory_space<vmem>>, %arg9: memref<1x16x128xf32, #tpu.memory_space<vmem>>) attributes {dimension_semantics = [#tpu.dimension_semantics<parallel>], iteration_bounds = array<i64: 2>, scalar_prefetch = 0 : i64, scratch_operands = 0 : i64, tpu.core_type = #tpu.core_type<tc>, window_params = [{transform_indices = @transform_0, window_bounds = array<i64: 1, 16, 128>}, {transform_indices = @transform_1, window_bounds = array<i64: 1, 16, 16>}, {pipeline_mode = #tpu.pipeline_mode<synchronous>, transform_indices = @transform_2, window_bounds = array<i64: 128, 128>}, {pipeline_mode = #tpu.pipeline_mode<synchronous>, transform_indices = @transform_3, window_bounds = array<i64: 128, 128>}, {pipeline_mode = #tpu.pipeline_mode<synchronous>, transform_indices = @transform_4, window_bounds = array<i64: 128, 128>}, {pipeline_mode = #tpu.pipeline_mode<synchronous>, transform_indices = @transform_5, window_bounds = array<i64: 3, 128>}, {pipeline_mode = #tpu.pipeline_mode<synchronous>, transform_indices = @transform_6, window_bounds = array<i64: 3, 128>}, {pipeline_mode = #tpu.pipeline_mode<synchronous>, transform_indices = @transform_7, window_bounds = array<i64: 3, 128>}, {transform_indices = @transform_8, window_bounds = array<i64: 1, 16, 128>}]} {
    %0 = tpu.iota {dimensions = array<i32: 2>} : vector<1x1x128xi32>
    %c32_i32 = arith.constant 32 : i32
    %1 = vector.broadcast %c32_i32 : i32 to vector<1x1x128xi32>
    %2 = arith.cmpi slt, %0, %1 : vector<1x1x128xi32>
    %3 = tpu.iota {dimensions = array<i32: 2>} : vector<1x1x128xi32>
    %c24_i32 = arith.constant 24 : i32
    %4 = vector.broadcast %c24_i32 : i32 to vector<1x1x128xi32>
    %5 = arith.cmpi slt, %3, %4 : vector<1x1x128xi32>
    %c0 = arith.constant 0 : index
    %c0_0 = arith.constant 0 : index
    %c0_1 = arith.constant 0 : index
    %6 = vector.load %arg1[%c0, %c0_0, %c0_1] : memref<1x16x128xbf16, #tpu.memory_space<vmem>>, vector<1x16x128xbf16>
    %7 = vector.shape_cast %6 : vector<1x16x128xbf16> to vector<16x128xbf16>
    %c0_2 = arith.constant 0 : index
    %c0_3 = arith.constant 0 : index
    %8 = vector.load %arg3[%c0_2, %c0_3] : memref<128x128xbf16, #tpu.memory_space<vmem>>, vector<128x128xbf16>
    %cst = arith.constant dense<0.000000e+00> : vector<16x128xf32>
    %9 = tpu.matmul %7, %8, %cst {dimension_numbers = #tpu.dot_dimension_numbers<[1], [0], [0], [1], [0, 0, 1, 1], [], []>} : vector<16x128xbf16>, vector<128x128xbf16>, vector<16x128xf32> -> vector<16x128xf32>
    %10 = arith.truncf %9 : vector<16x128xf32> to vector<16x128xbf16>
    %11 = vector.shape_cast %10 : vector<16x128xbf16> to vector<1x16x128xbf16>
    %c0_4 = arith.constant 0 : index
    %c0_5 = arith.constant 0 : index
    %12 = vector.load %arg6[%c0_4, %c0_5] : memref<3x128xf32, #tpu.memory_space<vmem>>, vector<3x128xf32>
    %13 = vector.extract_strided_slice %12 {offsets = [0, 0], sizes = [1, 128], strides = [1, 1]} : vector<3x128xf32> to vector<1x128xf32>
    %14 = vector.extract_strided_slice %12 {offsets = [1, 0], sizes = [1, 128], strides = [1, 1]} : vector<3x128xf32> to vector<1x128xf32>
    %15 = vector.extract_strided_slice %12 {offsets = [2, 0], sizes = [1, 128], strides = [1, 1]} : vector<3x128xf32> to vector<1x128xf32>
    %c0_6 = arith.constant 0 : index
    %c0_7 = arith.constant 0 : index
    %c0_8 = arith.constant 0 : index
    %16 = vector.load %arg2[%c0_6, %c0_7, %c0_8] : memref<1x16x16xbf16, #tpu.memory_space<vmem>>, vector<1x16x16xbf16>
    "tpu.trace_start"() <{level = 10 : i32, message = "bnm,bmd->bnd"}> : () -> ()
    %cst_9 = arith.constant dense<0.000000e+00> : vector<1x16x128xf32>
    %17 = tpu.matmul %16, %11, %cst_9 {dimension_numbers = #tpu.dot_dimension_numbers<[2], [1], [1], [2], [0, 0, 0, 1, 1, 2], [0], [0]>} : vector<1x16x16xbf16>, vector<1x16x128xbf16>, vector<1x16x128xf32> -> vector<1x16x128xf32>
    "tpu.trace_stop"() : () -> ()
    %18 = vector.shape_cast %13 : vector<1x128xf32> to vector<1x1x128xf32>
    %19 = vector.broadcast %18 : vector<1x1x128xf32> to vector<1x16x128xf32>
    %20 = arith.addf %17, %19 : vector<1x16x128xf32>
    %cst_10 = arith.constant dense<0.000000e+00> : vector<1x16xf32>
    %21 = vector.multi_reduction <add>, %20, %cst_10 [2] : vector<1x16x128xf32> to vector<1x16xf32>
    %22 = vector.shape_cast %21 : vector<1x16xf32> to vector<1x16x1xf32>
    %cst_11 = arith.constant 3.125000e-02 : f32
    %23 = vector.broadcast %cst_11 : f32 to vector<1x16x1xf32>
    %24 = arith.mulf %22, %23 : vector<1x16x1xf32>
    %25 = vector.broadcast %24 : vector<1x16x1xf32> to vector<1x16x128xf32>
    %26 = arith.subf %20, %25 : vector<1x16x128xf32>
    %cst_12 = arith.constant 0.000000e+00 : f32
    %27 = vector.shape_cast %2 : vector<1x1x128xi1> to vector<1x1x128xi1>
    %28 = vector.broadcast %27 : vector<1x1x128xi1> to vector<1x16x128xi1>
    %29 = vector.broadcast %cst_12 : f32 to vector<1x16x128xf32>
    %30 = arith.select %28, %26, %29 : vector<1x16x128xi1>, vector<1x16x128xf32>
    %31 = arith.mulf %30, %30 : vector<1x16x128xf32>
    %cst_13 = arith.constant dense<0.000000e+00> : vector<1x16xf32>
    %32 = vector.multi_reduction <add>, %31, %cst_13 [2] : vector<1x16x128xf32> to vector<1x16xf32>
    %33 = vector.shape_cast %32 : vector<1x16xf32> to vector<1x16x1xf32>
    %cst_14 = arith.constant 3.125000e-02 : f32
    %34 = vector.broadcast %cst_14 : f32 to vector<1x16x1xf32>
    %35 = arith.mulf %33, %34 : vector<1x16x1xf32>
    %cst_15 = arith.constant 9.99999974E-6 : f32
    %36 = vector.broadcast %cst_15 : f32 to vector<1x16x1xf32>
    %37 = arith.addf %35, %36 : vector<1x16x1xf32>
    %38 = math.rsqrt %37 : vector<1x16x1xf32>
    %39 = vector.broadcast %38 : vector<1x16x1xf32> to vector<1x16x128xf32>
    %40 = arith.mulf %30, %39 : vector<1x16x128xf32>
    %41 = vector.shape_cast %14 : vector<1x128xf32> to vector<1x1x128xf32>
    %42 = vector.broadcast %41 : vector<1x1x128xf32> to vector<1x16x128xf32>
    %43 = arith.mulf %40, %42 : vector<1x16x128xf32>
    %44 = vector.shape_cast %15 : vector<1x128xf32> to vector<1x1x128xf32>
    %45 = vector.broadcast %44 : vector<1x1x128xf32> to vector<1x16x128xf32>
    %46 = arith.addf %43, %45 : vector<1x16x128xf32>
    %cst_16 = arith.constant 0.000000e+00 : f32
    %47 = vector.broadcast %cst_16 : f32 to vector<1x16x128xf32>
    %48 = arith.maximumf %46, %47 : vector<1x16x128xf32>
    %49 = vector.shape_cast %48 : vector<1x16x128xf32> to vector<16x128xf32>
    %50 = arith.truncf %49 : vector<16x128xf32> to vector<16x128xbf16>
    %c0_17 = arith.constant 0 : index
    %c0_18 = arith.constant 0 : index
    %51 = vector.load %arg4[%c0_17, %c0_18] : memref<128x128xbf16, #tpu.memory_space<vmem>>, vector<128x128xbf16>
    %cst_19 = arith.constant dense<0.000000e+00> : vector<16x128xf32>
    %52 = tpu.matmul %50, %51, %cst_19 {dimension_numbers = #tpu.dot_dimension_numbers<[1], [0], [0], [1], [0, 0, 1, 1], [], []>} : vector<16x128xbf16>, vector<128x128xbf16>, vector<16x128xf32> -> vector<16x128xf32>
    %53 = arith.truncf %52 : vector<16x128xf32> to vector<16x128xbf16>
    %54 = vector.shape_cast %53 : vector<16x128xbf16> to vector<1x16x128xbf16>
    %c0_20 = arith.constant 0 : index
    %c0_21 = arith.constant 0 : index
    %55 = vector.load %arg7[%c0_20, %c0_21] : memref<3x128xf32, #tpu.memory_space<vmem>>, vector<3x128xf32>
    %56 = vector.extract_strided_slice %55 {offsets = [0, 0], sizes = [1, 128], strides = [1, 1]} : vector<3x128xf32> to vector<1x128xf32>
    %57 = vector.extract_strided_slice %55 {offsets = [1, 0], sizes = [1, 128], strides = [1, 1]} : vector<3x128xf32> to vector<1x128xf32>
    %58 = vector.extract_strided_slice %55 {offsets = [2, 0], sizes = [1, 128], strides = [1, 1]} : vector<3x128xf32> to vector<1x128xf32>
    %c0_22 = arith.constant 0 : index
    %c0_23 = arith.constant 0 : index
    %c0_24 = arith.constant 0 : index
    %59 = vector.load %arg2[%c0_22, %c0_23, %c0_24] : memref<1x16x16xbf16, #tpu.memory_space<vmem>>, vector<1x16x16xbf16>
    "tpu.trace_start"() <{level = 10 : i32, message = "bnm,bmd->bnd"}> : () -> ()
    %cst_25 = arith.constant dense<0.000000e+00> : vector<1x16x128xf32>
    %60 = tpu.matmul %59, %54, %cst_25 {dimension_numbers = #tpu.dot_dimension_numbers<[2], [1], [1], [2], [0, 0, 0, 1, 1, 2], [0], [0]>} : vector<1x16x16xbf16>, vector<1x16x128xbf16>, vector<1x16x128xf32> -> vector<1x16x128xf32>
    "tpu.trace_stop"() : () -> ()
    %61 = vector.shape_cast %56 : vector<1x128xf32> to vector<1x1x128xf32>
    %62 = vector.broadcast %61 : vector<1x1x128xf32> to vector<1x16x128xf32>
    %63 = arith.addf %60, %62 : vector<1x16x128xf32>
    %cst_26 = arith.constant dense<0.000000e+00> : vector<1x16xf32>
    %64 = vector.multi_reduction <add>, %63, %cst_26 [2] : vector<1x16x128xf32> to vector<1x16xf32>
    %65 = vector.shape_cast %64 : vector<1x16xf32> to vector<1x16x1xf32>
    %cst_27 = arith.constant 3.125000e-02 : f32
    %66 = vector.broadcast %cst_27 : f32 to vector<1x16x1xf32>
    %67 = arith.mulf %65, %66 : vector<1x16x1xf32>
    %68 = vector.broadcast %67 : vector<1x16x1xf32> to vector<1x16x128xf32>
    %69 = arith.subf %63, %68 : vector<1x16x128xf32>
    %cst_28 = arith.constant 0.000000e+00 : f32
    %70 = vector.shape_cast %2 : vector<1x1x128xi1> to vector<1x1x128xi1>
    %71 = vector.broadcast %70 : vector<1x1x128xi1> to vector<1x16x128xi1>
    %72 = vector.broadcast %cst_28 : f32 to vector<1x16x128xf32>
    %73 = arith.select %71, %69, %72 : vector<1x16x128xi1>, vector<1x16x128xf32>
    %74 = arith.mulf %73, %73 : vector<1x16x128xf32>
    %cst_29 = arith.constant dense<0.000000e+00> : vector<1x16xf32>
    %75 = vector.multi_reduction <add>, %74, %cst_29 [2] : vector<1x16x128xf32> to vector<1x16xf32>
    %76 = vector.shape_cast %75 : vector<1x16xf32> to vector<1x16x1xf32>
    %cst_30 = arith.constant 3.125000e-02 : f32
    %77 = vector.broadcast %cst_30 : f32 to vector<1x16x1xf32>
    %78 = arith.mulf %76, %77 : vector<1x16x1xf32>
    %cst_31 = arith.constant 9.99999974E-6 : f32
    %79 = vector.broadcast %cst_31 : f32 to vector<1x16x1xf32>
    %80 = arith.addf %78, %79 : vector<1x16x1xf32>
    %81 = math.rsqrt %80 : vector<1x16x1xf32>
    %82 = vector.broadcast %81 : vector<1x16x1xf32> to vector<1x16x128xf32>
    %83 = arith.mulf %73, %82 : vector<1x16x128xf32>
    %84 = vector.shape_cast %57 : vector<1x128xf32> to vector<1x1x128xf32>
    %85 = vector.broadcast %84 : vector<1x1x128xf32> to vector<1x16x128xf32>
    %86 = arith.mulf %83, %85 : vector<1x16x128xf32>
    %87 = vector.shape_cast %58 : vector<1x128xf32> to vector<1x1x128xf32>
    %88 = vector.broadcast %87 : vector<1x1x128xf32> to vector<1x16x128xf32>
    %89 = arith.addf %86, %88 : vector<1x16x128xf32>
    %cst_32 = arith.constant 0.000000e+00 : f32
    %90 = vector.broadcast %cst_32 : f32 to vector<1x16x128xf32>
    %91 = arith.maximumf %89, %90 : vector<1x16x128xf32>
    %92 = vector.shape_cast %91 : vector<1x16x128xf32> to vector<16x128xf32>
    %93 = arith.truncf %92 : vector<16x128xf32> to vector<16x128xbf16>
    %c0_33 = arith.constant 0 : index
    %c0_34 = arith.constant 0 : index
    %94 = vector.load %arg5[%c0_33, %c0_34] : memref<128x128xbf16, #tpu.memory_space<vmem>>, vector<128x128xbf16>
    %cst_35 = arith.constant dense<0.000000e+00> : vector<16x128xf32>
    %95 = tpu.matmul %93, %94, %cst_35 {dimension_numbers = #tpu.dot_dimension_numbers<[1], [0], [0], [1], [0, 0, 1, 1], [], []>} : vector<16x128xbf16>, vector<128x128xbf16>, vector<16x128xf32> -> vector<16x128xf32>
    %96 = arith.truncf %95 : vector<16x128xf32> to vector<16x128xbf16>
    %97 = vector.shape_cast %96 : vector<16x128xbf16> to vector<1x16x128xbf16>
    %c0_36 = arith.constant 0 : index
    %c0_37 = arith.constant 0 : index
    %98 = vector.load %arg8[%c0_36, %c0_37] : memref<3x128xf32, #tpu.memory_space<vmem>>, vector<3x128xf32>
    %99 = vector.extract_strided_slice %98 {offsets = [0, 0], sizes = [1, 128], strides = [1, 1]} : vector<3x128xf32> to vector<1x128xf32>
    %100 = vector.extract_strided_slice %98 {offsets = [1, 0], sizes = [1, 128], strides = [1, 1]} : vector<3x128xf32> to vector<1x128xf32>
    %101 = vector.extract_strided_slice %98 {offsets = [2, 0], sizes = [1, 128], strides = [1, 1]} : vector<3x128xf32> to vector<1x128xf32>
    %c0_38 = arith.constant 0 : index
    %c0_39 = arith.constant 0 : index
    %c0_40 = arith.constant 0 : index
    %102 = vector.load %arg2[%c0_38, %c0_39, %c0_40] : memref<1x16x16xbf16, #tpu.memory_space<vmem>>, vector<1x16x16xbf16>
    "tpu.trace_start"() <{level = 10 : i32, message = "bnm,bmd->bnd"}> : () -> ()
    %cst_41 = arith.constant dense<0.000000e+00> : vector<1x16x128xf32>
    %103 = tpu.matmul %102, %97, %cst_41 {dimension_numbers = #tpu.dot_dimension_numbers<[2], [1], [1], [2], [0, 0, 0, 1, 1, 2], [0], [0]>} : vector<1x16x16xbf16>, vector<1x16x128xbf16>, vector<1x16x128xf32> -> vector<1x16x128xf32>
    "tpu.trace_stop"() : () -> ()
    %104 = vector.shape_cast %99 : vector<1x128xf32> to vector<1x1x128xf32>
    %105 = vector.broadcast %104 : vector<1x1x128xf32> to vector<1x16x128xf32>
    %106 = arith.addf %103, %105 : vector<1x16x128xf32>
    %cst_42 = arith.constant dense<0.000000e+00> : vector<1x16xf32>
    %107 = vector.multi_reduction <add>, %106, %cst_42 [2] : vector<1x16x128xf32> to vector<1x16xf32>
    %108 = vector.shape_cast %107 : vector<1x16xf32> to vector<1x16x1xf32>
    %cst_43 = arith.constant 0.0416666679 : f32
    %109 = vector.broadcast %cst_43 : f32 to vector<1x16x1xf32>
    %110 = arith.mulf %108, %109 : vector<1x16x1xf32>
    %111 = vector.broadcast %110 : vector<1x16x1xf32> to vector<1x16x128xf32>
    %112 = arith.subf %106, %111 : vector<1x16x128xf32>
    %cst_44 = arith.constant 0.000000e+00 : f32
    %113 = vector.shape_cast %5 : vector<1x1x128xi1> to vector<1x1x128xi1>
    %114 = vector.broadcast %113 : vector<1x1x128xi1> to vector<1x16x128xi1>
    %115 = vector.broadcast %cst_44 : f32 to vector<1x16x128xf32>
    %116 = arith.select %114, %112, %115 : vector<1x16x128xi1>, vector<1x16x128xf32>
    %117 = arith.mulf %116, %116 : vector<1x16x128xf32>
    %cst_45 = arith.constant dense<0.000000e+00> : vector<1x16xf32>
    %118 = vector.multi_reduction <add>, %117, %cst_45 [2] : vector<1x16x128xf32> to vector<1x16xf32>
    %119 = vector.shape_cast %118 : vector<1x16xf32> to vector<1x16x1xf32>
    %cst_46 = arith.constant 0.0416666679 : f32
    %120 = vector.broadcast %cst_46 : f32 to vector<1x16x1xf32>
    %121 = arith.mulf %119, %120 : vector<1x16x1xf32>
    %cst_47 = arith.constant 9.99999974E-6 : f32
    %122 = vector.broadcast %cst_47 : f32 to vector<1x16x1xf32>
    %123 = arith.addf %121, %122 : vector<1x16x1xf32>
    %124 = math.rsqrt %123 : vector<1x16x1xf32>
    %125 = vector.broadcast %124 : vector<1x16x1xf32> to vector<1x16x128xf32>
    %126 = arith.mulf %116, %125 : vector<1x16x128xf32>
    %127 = vector.shape_cast %100 : vector<1x128xf32> to vector<1x1x128xf32>
    %128 = vector.broadcast %127 : vector<1x1x128xf32> to vector<1x16x128xf32>
    %129 = arith.mulf %126, %128 : vector<1x16x128xf32>
    %130 = vector.shape_cast %101 : vector<1x128xf32> to vector<1x1x128xf32>
    %131 = vector.broadcast %130 : vector<1x1x128xf32> to vector<1x16x128xf32>
    %132 = arith.addf %129, %131 : vector<1x16x128xf32>
    %c0_48 = arith.constant 0 : index
    %c0_49 = arith.constant 0 : index
    %c0_50 = arith.constant 0 : index
    %133 = vector.load %arg9[%c0_48, %c0_49, %c0_50] : memref<1x16x128xf32, #tpu.memory_space<vmem>>, vector<1x16x128xf32>
    tpu.vector_store %arg9[%c0_48, %c0_49, %c0_50], %132 {strides = array<i32>} : memref<1x16x128xf32, #tpu.memory_space<vmem>>, vector<1x16x128xf32>,
    return
  }
  func.func @transform_0(%arg0: i32) -> (i32, i32, i32) {
    %c0_i32 = arith.constant 0 : i32
    %c0_i32_0 = arith.constant 0 : i32
    %c0_i32_1 = arith.constant 0 : i32
    return %arg0, %c0_i32, %c0_i32_0 : i32, i32, i32
  }
  func.func @transform_1(%arg0: i32) -> (i32, i32, i32) {
    %c0_i32 = arith.constant 0 : i32
    %c0_i32_0 = arith.constant 0 : i32
    %c0_i32_1 = arith.constant 0 : i32
    return %arg0, %c0_i32, %c0_i32_0 : i32, i32, i32
  }
  func.func @transform_2(%arg0: i32) -> (i32, i32) {
    %c0_i32 = arith.constant 0 : i32
    %c0_i32_0 = arith.constant 0 : i32
    %c0_i32_1 = arith.constant 0 : i32
    return %c0_i32, %c0_i32_0 : i32, i32
  }
  func.func @transform_3(%arg0: i32) -> (i32, i32) {
    %c0_i32 = arith.constant 0 : i32
    %c0_i32_0 = arith.constant 0 : i32
    %c0_i32_1 = arith.constant 0 : i32
    return %c0_i32, %c0_i32_0 : i32, i32
  }
  func.func @transform_4(%arg0: i32) -> (i32, i32) {
    %c0_i32 = arith.constant 0 : i32
    %c0_i32_0 = arith.constant 0 : i32
    %c0_i32_1 = arith.constant 0 : i32
    return %c0_i32, %c0_i32_0 : i32, i32
  }
  func.func @transform_5(%arg0: i32) -> (i32, i32) {
    %c0_i32 = arith.constant 0 : i32
    %c0_i32_0 = arith.constant 0 : i32
    %c0_i32_1 = arith.constant 0 : i32
    return %c0_i32, %c0_i32_0 : i32, i32
  }
  func.func @transform_6(%arg0: i32) -> (i32, i32) {
    %c0_i32 = arith.constant 0 : i32
    %c0_i32_0 = arith.constant 0 : i32
    %c0_i32_1 = arith.constant 0 : i32
    return %c0_i32, %c0_i32_0 : i32, i32
  }
  func.func @transform_7(%arg0: i32) -> (i32, i32) {
    %c0_i32 = arith.constant 0 : i32
    %c0_i32_0 = arith.constant 0 : i32
    %c0_i32_1 = arith.constant 0 : i32
    return %c0_i32, %c0_i32_0 : i32, i32
  }
  func.func @transform_8(%arg0: i32) -> (i32, i32, i32) {
    %c0_i32 = arith.constant 0 : i32
    %c0_i32_0 = arith.constant 0 : i32
    %c0_i32_1 = arith.constant 0 : i32
    return %arg0, %c0_i32, %c0_i32_0 : i32, i32, i32
  }
}

</mosaic_0001>

<bundles_post_ra>
// kernel: tpu_custom_call.1
= control target key start
LH: loop header
LB: loop body
LE: loop exit
PB: predicated region body
PF: predicated region fallthrough
CT: control target
= control target key end

     0   :  { %s2078_s0 = inlined_call_operand.hbm [shape: bf16[2,16,128], index: 0, kind: input, shape index: {}]   ;;  %s2079_s1 = inlined_call_operand.hbm [shape: bf16[2,16,16], index: 1, kind: input, shape index: {}]   ;;  %s2080_s2 = inlined_call_operand.hbm [shape: bf16[128,128], index: 2, kind: input, shape index: {}]   ;;  %s2081_s3 = inlined_call_operand.hbm [shape: bf16[128,128], index: 3, kind: input, shape index: {}]   ;;  %s2082_s4 = inlined_call_operand.hbm [shape: bf16[128,128], index: 4, kind: input, shape index: {}]   ;;  %s2083_s5 = inlined_call_operand.vmem [shape: f32[3,128], index: 5, kind: input, shape index: {}]   ;;  %s2084_s6 = inlined_call_operand.vmem [shape: f32[3,128], index: 6, kind: input, shape index: {}]   ;;  %s2085_s7 = inlined_call_operand.vmem [shape: f32[3,128], index: 7, kind: input, shape index: {}]   ;;  %s2086_s8 = inlined_call_operand.hbm [shape: f32[2,16,128], index: 8, kind: output, shape index: {}]  }
   0x1   :  { %2097 = sst [smem:[#allocation20_spill]] %s2078_s0 }
   0x2   :  { %2098 = sst [smem:[#allocation21_spill]] %s2080_s2 }
   0x3   :  { %2099 = sst [smem:[#allocation22_spill]] %s2081_s3 }
   0x4   :  { %2100 = sst [smem:[#allocation23_spill]] %s2082_s4 }
   0x5   :  { %13 = vsyncpa [#allocation3], 0 }
   0x6   :  { %15 = vsyncpa [#allocation3 + $0x1], 0 }
   0x7   :  { %16 = vsyncpa [#allocation6], 0 }
   0x8   :  { %18 = vsyncpa [#allocation6 + $0x1], 0 }
   0x9   :  { %19 = vsyncpa [#allocation9], 0 }
   0xa   :  { %20 = vsyncpa [#allocation4], 0 }
   0xb   :  { %22 = vsyncpa [#allocation4 + $0x1], 0  ;;  %s1731_s27 = smov 0   ;;  %s1733_s28 = smov 0  }
   0xc   :  { %s1735_s29 = smov 0   ;;  %s1737_s30 = smov 0  }
   0xd LB: > { %2101 = sst [smem:[#allocation17_spill]] %s1668_s29  ;;  %s1752_s9 = sadd.s32 4294967295, %s1672_s30   ;;  %s1672_s30 = sphi %s1737_s30, %s2124_s30   ;;  %s1668_s29 = sphi %s1735_s29, %s2126_s29   ;;  %s1664_s28 = sphi %s1733_s28, %s2128_s28   ;;  %s1660_s27 = sphi %s1731_s27, %s2127_s27  }
   0xe   : > { %s1165_s10 = sadd.s32 4294967294, %s1672_s30   ;;  %p48_p0 = scmp.ne.s32.totalorder %s1664_s28, %s1660_s27 }
   0xf   : > { %p2087_p1 = scmp.eq.s32.totalorder %s1752_s9, 0  ;;  %p224_p2 = scmp.eq.s32.totalorder %s1752_s9, 1 }
  0x10   : > { %p230_p3 = scmp.eq.s32.totalorder %s1165_s10, 1  ;;  %p1166_p5 = scmp.ge.s32.totalorder %s1672_s30, 1 }
  0x11   : > { %p1761_p4 = por %p2087_p1, %p48_p0  ;;  %p237_p7 = scmp.lt.s32.totalorder %s1672_s30, 3 }
  0x12   : > { %p1766_p6 = por %p230_p3, %p48_p0  ;;  %s1674_s14 = smov [#allocation7]  }
  0x13   : > { %s2102_s11 = scalar_select %p1761_p4, 1, 0 }
  0x14   : > { %s2103_s12 = scalar_select %p1766_p6, 1, 0 }
  0x15   : > { %p1771_p8 = pnand %p1166_p5, %p237_p7  ;;  %s249_s15 = sshll.u32 %s1674_s14, 4  ;;  %s250_s15 = int_to_ptr.vmem [resolvable:$true] %s249_s15 }
  0x16   : > { %s1675_s17 = smov [#allocation8]   ;;  %s1676_s19 = smov [#allocation10]  }
  0x17   : > { %p1352_p9 = pneg %p1771_p8  ;;  %s262_s18 = sshll.u32 %s1675_s17, 4  ;;  %s263_s18 = int_to_ptr.vmem [resolvable:$true] %s262_s18 }
  0x18   : > { %s275_s20 = sshll.u32 %s1676_s19, 4  ;;  %s1473_s21 = scalar_lea.vmem %s250_s15, 1024  ;;  %s276_s20 = int_to_ptr.vmem [resolvable:$true] %s275_s20 }
  0x19   : > { %p1780_p11 = pnand %p1352_p9, %p2087_p1  ;;  %p1474_p13 = scmp.ne.s32.totalorder %s250_s15, %s1473_s21 }
  0x1a   : > { %p1481_p5 = scmp.lt.s32.totalorder %s250_s15, %s250_s15  ;;  %p1482_p7 = scmp.lt.s32.totalorder %s1473_s21, %s1473_s21 }
  0x1b   : > { %p1464_p12 = pneg %p1780_p11 }
  0x1c   : > { %p1483_p9 = por %p1482_p7, %p1481_p5 }
  0x1d   : > { %p1476_p0 = pnand %p1474_p13, %p1464_p12 }
  0x1f   : > { %p1477_p3 = pneg %p1476_p0 }
  0x21   : > { %p1484_p10 = pnand %p1483_p9, %p1477_p3 }
  0x23   : > { %1487 = shalt.err (!%p1484_p10)
}
  0x24   : > { %s2088_s22 = smov 64   ;;  %s2090_s23 = smov 4  }
  0x25   : > { %s2106_s2 = sld [smem:[#allocation21_spill]]  ;;  %s1499_s26 = scalar_lea.vmem %s263_s18, 1024 }
  0x26   : > { %p1500_p13 = scmp.ne.s32.totalorder %s263_s18, %s1499_s26  ;;  %p1507_p3 = scmp.lt.s32.totalorder %s263_s18, %s263_s18 }
  0x27   : > { %p1508_p10 = scmp.lt.s32.totalorder %s1499_s26, %s1499_s26 }
  0x28   : > { %p1502_p0 = pnand %p1500_p13, %p1464_p12 }
  0x29   : > { %p1509_p7 = por %p1508_p10, %p1507_p3 }
  0x2a   : > { %p1503_p5 = pneg %p1502_p0 }
  0x2b   : > { %1355 = dma.hbm_to_vmem [thread:$0]  (!%p1780_p11), %s2106_s2, 1024, %s250_s15, [#allocation6], %s2088_s22, %s2088_s22, %s2090_s23  }
  0x2c   : > { %p1510_p9 = pnand %p1509_p7, %p1503_p5 }
  0x2e   : > { %1513 = shalt.err (!%p1510_p9)
}
  0x2f   : > { %s2107_s3 = sld [smem:[#allocation22_spill]]  ;;  %s1525_s15 = scalar_lea.vmem %s276_s20, 1024 }
  0x30   : > { %p1526_p1 = scmp.ne.s32.totalorder %s276_s20, %s1525_s15  ;;  %p1533_p3 = scmp.lt.s32.totalorder %s276_s20, %s276_s20 }
  0x31   : > { %p1534_p5 = scmp.lt.s32.totalorder %s1525_s15, %s1525_s15 }
  0x32   : > { %p1528_p13 = pnand %p1526_p1, %p1464_p12 }
  0x33   : > { %p1535_p10 = por %p1534_p5, %p1533_p3 }
  0x34   : > { %p1529_p0 = pneg %p1528_p13 }
  0x35   : > { %1358 = dma.hbm_to_vmem [thread:$0]  (!%p1780_p11), %s2107_s3, 1024, %s263_s18, [#allocation9], %s2088_s22, %s2088_s22, %s2090_s23  }
  0x36   : > { %p1536_p7 = pnand %p1535_p10, %p1529_p0 }
  0x38   : > { %1539 = shalt.err (!%p1536_p7)
}
  0x39   : > { %s2108_s4 = sld [smem:[#allocation23_spill]]  ;;  %s1820_s18 = sadd.s32 1, %s1672_s30  }
  0x3a   : > { %2109 = sst [smem:[#allocation18_spill]] %s1820_s18  ;;  %s32_s16 = ssub.s32 %s1672_s30, %s1820_s18 }
  0x3b   : > { %s35_s21 = sadd.s32 1, %s1668_s29  ;;  %p33_p1 = scmp.eq.s32.totalorder %s32_s16, 0 }
  0x3c   : > { %p42_p12 = scmp.ne.s32.totalorder %s1668_s29, %s1664_s28  ;;  %p43_p9 = scmp.eq.s32.totalorder %s1672_s30, 0 }
  0x3d   : > { %p1376_p13 = scmp.lt.s32.totalorder %s1672_s30, 2  ;;  %s298_s26 = sand.u32 1, %s1668_s29  }
  0x3e   : > { %s1830_s24 = scalar_select %p33_p1, %s1668_s29, %s35_s21  }
  0x3f   : > { %1361 = dma.hbm_to_vmem [thread:$0]  (!%p1780_p11), %s2108_s4, 1024, %s276_s20, [#allocation9], %s2088_s22, %s2088_s22, %s2090_s23  }
  0x40   : > { %2110 = sst [smem:[#allocation19_spill]] %s1830_s24  ;;  %p44_p0 = por %p43_p9, %p42_p12 }
  0x41   : > { %p1834_p3 = por %p224_p2, %p42_p12  ;;  %s1220_s10 = sshll.u32 %s1672_s30, 7 }
  0x42   : > { %s1840_s20 = sshll.u32 %s298_s26, 3  ;;  %s2112_s0 = sld [smem:[#allocation20_spill]] }
  0x43   : > { %s2111_s25 = scalar_select %p1834_p3, 1, 0 }
  0x44   : > { %s302_s19 = scalar_lea.vmem [#allocation2], %s1840_s20  ;;  %p1848_p11 = pnand %p1376_p13, %p44_p0 }
  0x45   : > { %s309_s16 = sshll.u32 %s302_s19, 4  ;;  %s1857_s14 = scalar_lea.hbm %s2079_s1, %s1220_s10  ;;  %s1852_s16 = int_to_ptr.vmem [resolvable:$true] %s309_s16 }
  0x46   : > { %s1859_s15 = scalar_lea.sflag [#allocation3], %s298_s26  ;;  %p1542_p5 = pneg %p1848_p11 }
  0x48   : > { %s1845_s17 = scalar_lea.hbm %s2112_s0, %s1220_s10  ;;  %s1545_s4 = scalar_lea.hbm %s2112_s0, 256 }
  0x49   : > { %s1540_s2 = scalar_lea.hbm %s1845_s17, 128  ;;  %p1546_p1 = scmp.lt.s32.totalorder %s1845_s17, %s2112_s0 }
  0x4a   : > { %p1541_p2 = scmp.ne.s32.totalorder %s1845_s17, %s1540_s2  ;;  %p1547_p12 = scmp.lt.s32.totalorder %s1545_s4, %s1540_s2 }
  0x4c   : > { %p1543_p10 = pnand %p1542_p5, %p1541_p2  ;;  %p1548_p9 = por %p1547_p12, %p1546_p1 }
  0x4e   : > { %p1544_p7 = pneg %p1543_p10 }
  0x50   : > { %p1549_p13 = pnand %p1548_p9, %p1544_p7 }
  0x52   : > { %1552 = shalt.err (!%p1549_p13)
}
  0x53   : > { %s1553_s22 = scalar_lea.vmem %s1852_s16, 128  ;;  %s1679_s3 = smov [#allocation2]  }
  0x54   : > { %p1554_p0 = scmp.ne.s32.totalorder %s1852_s16, %s1553_s22  ;;  %s1558_s23 = sshll.u32 %s1679_s3, 4  ;;  %s1559_s23 = int_to_ptr.vmem [resolvable:$false] %s1558_s23 }
  0x55   : > { %s1560_s26 = scalar_lea.vmem %s1559_s23, 256  ;;  %p1561_p6 = scmp.lt.s32.totalorder %s1852_s16, %s1559_s23 }
  0x56   : > { %p1556_p2 = pnand %p1554_p0, %p1542_p5  ;;  %p1562_p3 = scmp.lt.s32.totalorder %s1560_s26, %s1553_s22 }
  0x58   : > { %p1557_p10 = pneg %p1556_p2  ;;  %p1563_p4 = por %p1562_p3, %p1561_p6 }
  0x5a   : > { %p1564_p1 = pnand %p1563_p4, %p1557_p10 }
  0x5c   : > { %1567 = shalt.err (!%p1564_p1)
}
  0x5d   : > { %s2114_s2 = smov 4   ;;  %s2115_s4 = smov 64  }
  0x5e   : > { %1365 = dma.hbm_to_vmem [thread:$0]  (!%p1848_p11), %s1845_s17, 128, %s1852_s16, %s1859_s15, %s2115_s4, %s2115_s4, %s2114_s2  }
  0x5f   : > { %s323_s29 = scalar_lea.vmem [#allocation5], %s1840_s20  ;;  %s319_s10 = sand.u32 1, %s1672_s30  }
  0x60   : > { %s330_s24 = sshll.u32 %s323_s29, 4  ;;  %s320_s19 = scalar_lea.sflag [#allocation6], %s319_s10  ;;  %s1891_s24 = int_to_ptr.vmem [resolvable:$true] %s330_s24 }
  0x61   : > { %s1568_s22 = scalar_lea.hbm %s1857_s14, 128  ;;  %s1573_s26 = scalar_lea.hbm %s2079_s1, 256 }
  0x62   : > { %p1569_p4 = scmp.ne.s32.totalorder %s1857_s14, %s1568_s22  ;;  %p1574_p7 = scmp.lt.s32.totalorder %s1857_s14, %s2079_s1 }
  0x63   : > { %p1575_p12 = scmp.lt.s32.totalorder %s1573_s26, %s1568_s22 }
  0x64   : > { %p1571_p6 = pnand %p1569_p4, %p1542_p5 }
  0x65   : > { %p1576_p9 = por %p1575_p12, %p1574_p7 }
  0x66   : > { %p1572_p3 = pneg %p1571_p6 }
  0x68   : > { %p1577_p13 = pnand %p1576_p9, %p1572_p3 }
  0x6a   : > { %1580 = shalt.err (!%p1577_p13)
}
  0x6b   : > { %s1581_s20 = scalar_lea.vmem %s1891_s24, 128  ;;  %s1680_s17 = smov [#allocation5]  }
  0x6c   : > { %p1582_p0 = scmp.ne.s32.totalorder %s1891_s24, %s1581_s20  ;;  %s1586_s16 = sshll.u32 %s1680_s17, 4  ;;  %s1587_s16 = int_to_ptr.vmem [resolvable:$false] %s1586_s16 }
  0x6d   : > { %s1588_s15 = scalar_lea.vmem %s1587_s16, 256  ;;  %p1589_p1 = scmp.lt.s32.totalorder %s1891_s24, %s1587_s16 }
  0x6e   : > { %p1584_p2 = pnand %p1582_p0, %p1542_p5  ;;  %p1590_p4 = scmp.lt.s32.totalorder %s1588_s15, %s1581_s20 }
  0x70   : > { %p1585_p10 = pneg %p1584_p2  ;;  %p1591_p6 = por %p1590_p4, %p1589_p1 }
  0x72   : > { %p1592_p7 = pnand %p1591_p6, %p1585_p10 }
  0x74   : > { %1595 = shalt.err (!%p1592_p7)
}
  0x75   : > { %1368 = dma.hbm_to_vmem [thread:$0]  (!%p1848_p11), %s1857_s14, 128, %s1891_s24, %s320_s19, %s2115_s4, %s2115_s4, %s2114_s2  }
  0x76   : > { %342 = sbr.rel (%p1771_p8) target bundleno = 2313 (0x909), region = 52  ;;  %s1921_s0 = sand.u32 (!%p1771_p8), 1, %s1664_s28  }
  0x77   : > { %s1178_s18 = sshll.u32 (!%p1771_p8), %s1921_s0, 3  ;;  %s345_s29 = scalar_lea.sflag (!%p1771_p8), [#allocation3], %s1921_s0 }
  0x78   : > { %s1925_s10 = scalar_lea.vmem (!%p1771_p8), [#allocation2], %s1178_s18  ;;  %p2116_p5 = scmp.ne.s32.totalorder (!%p1771_p8), %s2102_s11, 0 }
  0x7b   : > { %1639 = dma.done.wait (%p2116_p5), %s345_s29, 128  }
  0x7c   : > { %1641 = vsyncadd (%p2116_p5), %s345_s29, 4294967168  ;;  %s353_s21 = sand.u32 1, %s1752_s9   ;;  %s1932_s14 = scalar_lea.vmem [#allocation5], %s1178_s18 }
  0x7d   : > { %s354_s13 = scalar_lea.sflag [#allocation6], %s353_s21 }
  0x7e   : > { %1643 = dma.done.wait (%p2116_p5), %s354_s13, 128  }
  0x7f   : > { %1645 = vsyncadd (%p2116_p5), %s354_s13, 4294967168  ;;  %p2117_p8 = scmp.eq.s32.totalorder %s1752_s9, 0 }
  0x81   : > { %1647 = dma.done.wait (%p2117_p8), [#allocation6], 1024   ;;  %p2118_p11 = pmov %p2117_p8 }
  0x82   : > { %p2119_p3 = pmov %p2117_p8 }
  0x83   : > { %1649 = vsyncadd (%p2118_p11), [#allocation6], 4294966272 }
  0x84   : > { %1651 = dma.done.wait (%p2119_p3), [#allocation9], 2048   ;;  %p2120_p12 = pmov %p2119_p3 }
  0x85   : > { %v1681_v0 = vmov 0.0   ;;  %vm1682_vm0 = vmmov 0   ;;  %v1422_v1 = vld [vmem:[#allocation7 + $0x38] sm:$0xff]   ;;  %v1423_v2 = vld [vmem:[#allocation7 + $0x30] sm:$0xff]   ;;  %v1424_v3 = vld [vmem:[#allocation7 + $0x28] sm:$0xff]   ;;  %vm538_vm1 = vcmask 130048   ;;  %v408_v16 = vlaneseq }
  0x86   : > { %1653 = vsyncadd (%p2120_p12), [#allocation9], 4294965248  ;;  %1256 = vmatprep.subr.bf16.mxu0 %v1681_v0  ;;  %1272 = vmatprep.mubr.msk.bf16.mxu0 %vm1682_vm0, %v1681_v0  ;;  %v1425_v4 = vld [vmem:[#allocation7 + $0x20] sm:$0xff]   ;;  %v1426_v5 = vld [vmem:[#allocation7 + $0x18] sm:$0xff]   ;;  %s1183_s3 = sshll.u32 %s1921_s0, 4  ;;  %s1222_s23 = sshll.u32 %s1752_s9, 8 }
  0x87   : > { %1282 = vmatprep.subr.bf16.mxu1 %v1681_v0  ;;  %1298 = vmatprep.mubr.msk.bf16.mxu1 %vm1682_vm0, %v1681_v0  ;;  %v1427_v6 = vld [vmem:[#allocation7 + $0x10] sm:$0xff]   ;;  %v1428_v7 = vld [vmem:[#allocation7 + $0x8] sm:$0xff]   ;;  %v1429_v8 = vld [vmem:[#allocation7] sm:$0xff]   ;;  %v530_v17 = vshrl.u32 %v408_v16, 7  ;;  %v1974_v27 = vand.u32 127, %v408_v16  ;;  %s406_s26 = scalar_lea.vmem [#allocation11], %s1183_s3  ;;  %s2033_s15 = scalar_lea.hbm %s2086_s8, %s1222_s23 }
  0x88   : > { %1257 = vmatpush3.bf16.msra.mxu0 %v1422_v1  ;;  %v1430_v9 = vld [vmem:[%s1925_s10] sm:$0xff]   ;;  %v1431_v15 = vld [vmem:[%s1932_s14] sm:$0xff]   ;;  %s1041_s20 = sshll.u32 %s406_s26, 4  ;;  %s1028_s18 = scalar_lea.sflag [#allocation4], %s1921_s0  ;;  %s2035_s20 = int_to_ptr.vmem [resolvable:$true] %s1041_s20 }
  0x89   : > { %1258 = vmatprep.subr.bf16.mxu0 %v1681_v0  ;;  %v1968_v18 = vsub.s32 0, %v530_v17  ;;  %v526_v19 = vld [vmem:[%s2083_s5] sm:$0x7]  ;;  %vm410_vm2 = vcmp.lt.s32.totalorder %v1974_v27, 32  ;;  %v1432_v38 = vld [vmem:[#allocation8 + $0x38] sm:$0xff]   ;;  %v1433_v39 = vld [vmem:[#allocation8 + $0x30] sm:$0xff]  }
  0x8a   : > { %1283 = vmatpush3.bf16.msra.mxu1 %v1432_v38  ;;  %v1434_v40 = vld [vmem:[#allocation8 + $0x28] sm:$0xff]   ;;  %v1435_v41 = vld [vmem:[#allocation8 + $0x20] sm:$0xff]   ;;  %v1436_v42 = vld [vmem:[#allocation8 + $0x18] sm:$0xff]   ;;  %v1989_v52 = vsub.s32 1, %v530_v17  ;;  %v1992_v54 = vsub.s32 2, %v530_v17  ;;  %vm411_vm3 = vcmp.lt.s32.totalorder %v1974_v27, 24 }
  0x8b   : > { %v532_v20 = vrot.slane %v526_v19, %v1968_v18  ;;  %1284 = vmatprep.subr.bf16.mxu1 %v1681_v0  ;;  %v1437_v43 = vld [vmem:[#allocation8 + $0x10] sm:$0xff]   ;;  %v1438_v44 = vld [vmem:[#allocation8 + $0x8] sm:$0xff]   ;;  %v1439_v45 = vld [vmem:[#allocation8] sm:$0xff]   ;;  %s1596_s29 = scalar_lea.vmem %s2035_s20, 256  ;;  %p2121_p13 = scmp.ne.s32.totalorder %s2111_s25, 0 }
  0x8c   : > { %1259 = vmatpush3.bf16.msra.mxu0 %v1423_v2  ;;  %v612_v53 = vrot.slane %v526_v19, %v1989_v52  ;;  %v618_v57 = vrot.slane %v526_v19, %v1992_v54  ;;  %p1597_p9 = scmp.ne.s32.totalorder %s2035_s20, %s1596_s29  ;;  %s1683_s9 = smov [#allocation11]  }
  0x8d   : > { %1260 = vmatprep.subr.bf16.mxu0 %v1681_v0  ;;  %s1600_s10 = sshll.u32 %s1683_s9, 4  ;;  %s1601_s10 = int_to_ptr.vmem [resolvable:$false] %s1600_s10 }
  0x8e   : > { %1285 = vmatpush3.bf16.msra.mxu1 %v1433_v39  ;;  %p1598_p0 = pnand %p1597_p9, %p2121_p13  ;;  %s1602_s21 = scalar_lea.vmem %s1601_s10, 512 }
  0x8f   : > { %1286 = vmatprep.subr.bf16.mxu1 %v1681_v0  ;;  %p1603_p10 = scmp.lt.s32.totalorder %s2035_s20, %s1601_s10  ;;  %p1604_p1 = scmp.lt.s32.totalorder %s1602_s21, %s1596_s29 }
  0x90   : > { %1261 = vmatpush3.bf16.msra.mxu0 %v1424_v3  ;;  %p1599_p2 = pneg %p1598_p0 }
  0x91   : > { %1262 = vmatprep.subr.bf16.mxu0 %v1681_v0  ;;  %p1605_p4 = por %p1604_p1, %p1603_p10 }
  0x92   : > { %1287 = vmatpush3.bf16.msra.mxu1 %v1434_v40 }
  0x93   : > { %1288 = vmatprep.subr.bf16.mxu1 %v1681_v0  ;;  %p1606_p6 = pnand %p1605_p4, %p1599_p2 }
  0x94   : > { %1263 = vmatpush3.bf16.msra.mxu0 %v1425_v4 }
  0x95   : > { %1264 = vmatprep.subr.bf16.mxu0 %v1681_v0 }
  0x96   : > { %1289 = vmatpush3.bf16.msra.mxu1 %v1435_v41 }
  0x97   : > { %1290 = vmatprep.subr.bf16.mxu1 %v1681_v0 }
  0x98   : > { %1265 = vmatpush3.bf16.msra.mxu0 %v1426_v5 }
  0x99   : > { %1266 = vmatprep.subr.bf16.mxu0 %v1681_v0 }
  0x9a   : > { %1291 = vmatpush3.bf16.msra.mxu1 %v1436_v42 }
  0x9b   : > { %1292 = vmatprep.subr.bf16.mxu1 %v1681_v0 }
  0x9c   : > { %1267 = vmatpush3.bf16.msra.mxu0 %v1427_v6 }
  0x9d   : > { %1268 = vmatprep.subr.bf16.mxu0 %v1681_v0 }
  0x9e   : > { %1293 = vmatpush3.bf16.msra.mxu1 %v1437_v43 }
  0x9f   : > { %1294 = vmatprep.subr.bf16.mxu1 %v1681_v0 }
  0xa0   : > { %1269 = vmatpush3.bf16.msra.mxu0 %v1428_v7 }
  0xa1   : > { %1270 = vmatprep.subr.bf16.mxu0 %v1681_v0 }
  0xa2   : > { %1295 = vmatpush3.bf16.msra.mxu1 %v1438_v44 }
  0xa3   : > { %1296 = vmatprep.subr.bf16.mxu1 %v1681_v0 }
  0xa4   : > { %1271 = vmatpush3.bf16.msra.mxu0 %v1429_v8 }
  0xa5   : > { %1276 = vmatprep.subr.bf16.mxu0 %v1681_v0 }
  0xa6   : > { %1297 = vmatpush3.bf16.msra.mxu1 %v1439_v45 }
  0xa7   : > { %1273 = vmatmul.mubr.bf16.vlgmr.msra.gmra.mxu0 %v1430_v9  ;;  %1308 = vmatprep.subr.bf16.mxu1 %v1681_v0  ;;  %v1440_v9 = vld [vmem:[%s1932_s14] sm:$0xff]  }
  0xa8   : > { %1278 = vmatprep.mubr.msk.bf16.mxu0 %vm1682_vm0, %v1681_v0 }
 0x167   : > { %v518_v10 = vpop.f32.mrf.mxu0 }
 0x169   : > { %v1274_v11 = vpop.f32.mrf.mxu0 }
 0x16b   : > { %v521_v12 = vpop.f32.mrf.mxu0 }
 0x16c   : > { %v525_v13 = vpack.c.bf16 %v521_v12, %v518_v10  ;;  %v730_v10 = vld [vmem:[%s2084_s6] sm:$0x7] }
 0x16d   : > { %v1275_v14 = vpop.f32.mrf.mxu0  ;;  %v736_v11 = vrot.slane %v730_v10, %v1968_v18  ;;  %v813_v44 = vrot.slane %v730_v10, %v1989_v52 }
 0x16e   : > { %1277 = vmatpush3.bf16.msra.mxu0 %v525_v13 }
 0x16f   : > { %1302 = vmatprep.subr.bf16.mxu0 %v1681_v0 }
 0x171   : > { %1279 = vmatmul.mubr.msk.bf16.vlgmr.msra.gmra.mxu0 %vm538_vm1, %v1431_v15 }
 0x172   : > { %1304 = vmatprep.mubr.msk.bf16.mxu0 %vm1682_vm0, %v1681_v0 }
 0x231   : > { %v576_v21 = vpop.f32.mrf.mxu0 }
 0x232   : > { %v577_v22 = vadd.f32 %v576_v21, %v532_v20 }
 0x233   : > { %v1280_v23 = vpop.f32.mrf.mxu0 }
 0x234   : > { %583 = vadd.xlane.f32.xlu0 %v577_v22 }
 0x235   : > { %v579_v24 = vpop.f32.mrf.mxu0 }
 0x236   : > { %v580_v25 = vadd.f32 %v579_v24, %v532_v20 }
 0x237   : > { %v1281_v26 = vpop.f32.mrf.mxu0 }
 0x238   : > { %585 = vadd.xlane.f32.xlu0 %v580_v25 }
 0x2bd   : > { %v584_v28 = vpop.xlane.xlu0 %583 }
 0x2be   : > { %v587_v29 = vmul.f32 0.03125, %v584_v28 }
 0x2c0   : > { %v589_v30 = vsub.f32 %v577_v22, %v587_v29 }
 0x2c1   : > { %v586_v31 = vpop.xlane.xlu0 %585 }
 0x2c2   : > { %v588_v32 = vmul.f32 0.03125, %v586_v31  ;;  %v593_v33 = vsel %vm410_vm2, %v589_v30, 0.0  ;;  %v1441_v30 = vld [vmem:[#allocation10 + $0x38] sm:$0xff]   ;;  %v1442_v31 = vld [vmem:[#allocation10 + $0x30] sm:$0xff]  }
 0x2c3   : > { %v595_v34 = vmul.f32 %v593_v33, %v593_v33 }
 0x2c4   : > { %v590_v35 = vsub.f32 %v580_v25, %v588_v32  ;;  %v1443_v32 = vld [vmem:[#allocation10 + $0x28] sm:$0xff]  }
 0x2c5   : > { %597 = vadd.xlane.f32.xlu1 %v595_v34  ;;  %v1445_v34 = vld [vmem:[#allocation10 + $0x18] sm:$0xff]  }
 0x2c6   : > { %v594_v36 = vsel %vm410_vm2, %v590_v35, 0.0  ;;  %v1446_v35 = vld [vmem:[#allocation10 + $0x10] sm:$0xff]  }
 0x2c7   : > { %v596_v37 = vmul.f32 %v594_v36, %v594_v36 }
 0x2c9   : > { %599 = vadd.xlane.f32.xlu1 %v596_v37  ;;  %v1448_v37 = vld [vmem:[#allocation10] sm:$0xff]  }
 0x34e   : > { %v598_v46 = vpop.xlane.xlu1 %597 }
 0x34f   : > { %v601_v47 = vmul.f32 0.03125, %v598_v46 }
 0x351   : > { %v603_v48 = vadd.f32 1e-05, %v601_v47  ;;  %v819_v47 = vrot.slane %v730_v10, %v1992_v54 }
 0x352   : > { %v600_v49 = vpop.xlane.xlu1 %599 }
 0x353   : > { %1450 = vrsqrt.f32 %v603_v48  ;;  %v602_v50 = vmul.f32 0.03125, %v600_v49 }
 0x355   : > { %v604_v51 = vadd.f32 1e-05, %v602_v50 }
 0x357   : > { %1452 = vrsqrt.f32 %v604_v51 }
 0x360   : > { %v1451_v55 = vpop.eup %1450 }
 0x361   : > { %v607_v56 = vmul.f32 %v1451_v55, %v593_v33  ;;  %v1444_v33 = vld [vmem:[#allocation10 + $0x20] sm:$0xff]  }
 0x363   : > { %v613_v58 = vmul.f32 %v612_v53, %v607_v56 }
 0x364   : > { %v1453_v59 = vpop.eup %1452 }
 0x365   : > { %v608_v60 = vmul.f32 %v1453_v59, %v594_v36  ;;  %v619_v62 = vadd.f32 %v618_v57, %v613_v58  ;;  %v1447_v36 = vld [vmem:[#allocation10 + $0x8] sm:$0xff]  }
 0x367   : > { %v614_v61 = vmul.f32 %v612_v53, %v608_v60  ;;  %v621_v1 = vmax.f32 %v619_v62, 0.0 }
 0x369   : > { %v620_v63 = vadd.f32 %v618_v57, %v614_v61 }
 0x36b   : > { %v622_v2 = vmax.f32 %v620_v63, 0.0  ;;  %v1449_v63 = vld [vmem:[%s1932_s14] sm:$0xff]  }
 0x36d   : > { %v623_v3 = vpack.c.bf16 %v622_v2, %v621_v1  ;;  %v931_v1 = vld [vmem:[%s2085_s7] sm:$0x7] }
 0x36e   : > { %v937_v2 = vrot.slane %v931_v1, %v1968_v18  ;;  %v1016_v27 = vrot.slane %v931_v1, %v1989_v52 }
 0x36f   : > { %1299 = vmatmul.mubr.bf16.vlgmr.msra.gmra.mxu1 %v623_v3 }
 0x370   : > { %1324 = vmatprep.mubr.msk.bf16.mxu1 %vm1682_vm0, %v1681_v0  ;;  %1309 = vmatpush3.bf16.msra.mxu1 %v1441_v30 }
 0x371   : > { %1310 = vmatprep.subr.bf16.mxu1 %v1681_v0 }
 0x374   : > { %1311 = vmatpush3.bf16.msra.mxu1 %v1442_v31 }
 0x375   : > { %1312 = vmatprep.subr.bf16.mxu1 %v1681_v0 }
 0x378   : > { %1313 = vmatpush3.bf16.msra.mxu1 %v1443_v32 }
 0x379   : > { %1314 = vmatprep.subr.bf16.mxu1 %v1681_v0 }
 0x37c   : > { %1315 = vmatpush3.bf16.msra.mxu1 %v1444_v33 }
 0x37d   : > { %1316 = vmatprep.subr.bf16.mxu1 %v1681_v0 }
 0x380   : > { %1317 = vmatpush3.bf16.msra.mxu1 %v1445_v34 }
 0x381   : > { %1318 = vmatprep.subr.bf16.mxu1 %v1681_v0 }
 0x384   : > { %1319 = vmatpush3.bf16.msra.mxu1 %v1446_v35 }
 0x385   : > { %1320 = vmatprep.subr.bf16.mxu1 %v1681_v0 }
 0x388   : > { %1321 = vmatpush3.bf16.msra.mxu1 %v1447_v36 }
 0x389   : > { %1322 = vmatprep.subr.bf16.mxu1 %v1681_v0 }
 0x38c   : > { %1323 = vmatpush3.bf16.msra.mxu1 %v1448_v37 }
 0x42f   : > { %v722_v4 = vpop.f32.mrf.mxu1 }
 0x431   : > { %v1300_v5 = vpop.f32.mrf.mxu1 }
 0x433   : > { %v725_v6 = vpop.f32.mrf.mxu1 }
 0x434   : > { %v729_v7 = vpack.c.bf16 %v725_v6, %v722_v4 }
 0x435   : > { %v1301_v8 = vpop.f32.mrf.mxu1 }
 0x436   : > { %1303 = vmatpush3.bf16.msra.mxu0 %v729_v7 }
 0x437   : > { %1328 = vmatprep.subr.bf16.mxu0 %v1681_v0 }
 0x439   : > { %1305 = vmatmul.mubr.msk.bf16.vlgmr.msra.gmra.mxu0 %vm538_vm1, %v1440_v9 }
 0x43a   : > { %1330 = vmatprep.mubr.msk.bf16.mxu0 %vm1682_vm0, %v1681_v0 }
 0x4f9   : > { %v779_v12 = vpop.f32.mrf.mxu0 }
 0x4fa   : > { %v780_v13 = vadd.f32 %v779_v12, %v736_v11 }
 0x4fb   : > { %v1306_v14 = vpop.f32.mrf.mxu0 }
 0x4fc   : > { %786 = vadd.xlane.f32.xlu0 %v780_v13 }
 0x4fd   : > { %v782_v15 = vpop.f32.mrf.mxu0 }
 0x4fe   : > { %v783_v16 = vadd.f32 %v782_v15, %v736_v11 }
 0x4ff   : > { %v1307_v17 = vpop.f32.mrf.mxu0 }
 0x500   : > { %788 = vadd.xlane.f32.xlu1 %v783_v16 }
 0x585   : > { %v787_v19 = vpop.xlane.xlu0 %786 }
 0x586   : > { %v790_v20 = vmul.f32 0.03125, %v787_v19 }
 0x588   : > { %v792_v21 = vsub.f32 %v780_v13, %v790_v20 }
 0x589   : > { %v789_v22 = vpop.xlane.xlu1 %788 }
 0x58a   : > { %v791_v23 = vmul.f32 0.03125, %v789_v22  ;;  %v794_v24 = vsel %vm410_vm2, %v792_v21, 0.0 }
 0x58b   : > { %v796_v25 = vmul.f32 %v794_v24, %v794_v24 }
 0x58c   : > { %v793_v26 = vsub.f32 %v783_v16, %v791_v23 }
 0x58d   : > { %798 = vadd.xlane.f32.xlu0 %v796_v25 }
 0x58e   : > { %v795_v28 = vsel %vm410_vm2, %v793_v26, 0.0  ;;  %v1022_v26 = vrot.slane %v931_v1, %v1992_v54 }
 0x58f   : > { %v797_v29 = vmul.f32 %v795_v28, %v795_v28 }
 0x591   : > { %800 = vadd.xlane.f32.xlu1 %v797_v29 }
 0x616   : > { %v799_v38 = vpop.xlane.xlu0 %798 }
 0x617   : > { %v802_v39 = vmul.f32 0.03125, %v799_v38 }
 0x619   : > { %v804_v40 = vadd.f32 1e-05, %v802_v39 }
 0x61a   : > { %v801_v41 = vpop.xlane.xlu1 %800 }
 0x61b   : > { %1454 = vrsqrt.f32 %v804_v40  ;;  %v803_v42 = vmul.f32 0.03125, %v801_v41 }
 0x61d   : > { %v805_v43 = vadd.f32 1e-05, %v803_v42 }
 0x61f   : > { %1456 = vrsqrt.f32 %v805_v43 }
 0x628   : > { %v1455_v45 = vpop.eup %1454 }
 0x629   : > { %v808_v46 = vmul.f32 %v1455_v45, %v794_v24 }
 0x62b   : > { %v814_v48 = vmul.f32 %v813_v44, %v808_v46 }
 0x62c   : > { %v1457_v49 = vpop.eup %1456 }
 0x62d   : > { %v809_v50 = vmul.f32 %v1457_v49, %v795_v28  ;;  %v820_v51 = vadd.f32 %v819_v47, %v814_v48 }
 0x62f   : > { %v815_v0 = vmul.f32 %v813_v44, %v809_v50  ;;  %v822_v55 = vmax.f32 %v820_v51, 0.0 }
 0x631   : > { %v821_v53 = vadd.f32 %v819_v47, %v815_v0 }
 0x633   : > { %v823_v56 = vmax.f32 %v821_v53, 0.0 }
 0x635   : > { %v824_v57 = vpack.c.bf16 %v823_v56, %v822_v55 }
 0x637   : > { %1325 = vmatmul.mubr.bf16.vlgmr.msra.gmra.mxu1 %v824_v57 }
 0x6f7   : > { %v923_v58 = vpop.f32.mrf.mxu1 }
 0x6f9   : > { %v1326_v59 = vpop.f32.mrf.mxu1 }
 0x6fb   : > { %v926_v60 = vpop.f32.mrf.mxu1 }
 0x6fc   : > { %v930_v61 = vpack.c.bf16 %v926_v60, %v923_v58 }
 0x6fd   : > { %v1327_v62 = vpop.f32.mrf.mxu1 }
 0x6fe   : > { %1329 = vmatpush3.bf16.msra.mxu0 %v930_v61 }
 0x701   : > { %1331 = vmatmul.mubr.msk.bf16.vlgmr.msra.gmra.mxu0 %vm538_vm1, %v1449_v63 }
 0x7c1   : > { %v980_v3 = vpop.f32.mrf.mxu0 }
 0x7c2   : > { %v981_v4 = vadd.f32 %v980_v3, %v937_v2 }
 0x7c3   : > { %v1332_v5 = vpop.f32.mrf.mxu0 }
 0x7c4   : > { %987 = vadd.xlane.f32.xlu0 %v981_v4 }
 0x7c5   : > { %v983_v6 = vpop.f32.mrf.mxu0 }
 0x7c6   : > { %v984_v7 = vadd.f32 %v983_v6, %v937_v2 }
 0x7c7   : > { %v1333_v8 = vpop.f32.mrf.mxu0 }
 0x7c8   : > { %989 = vadd.xlane.f32.xlu1 %v984_v7 }
 0x84d   : > { %v988_v9 = vpop.xlane.xlu0 %987 }
 0x84e   : > { %v991_v10 = vmul.f32 0.041666668, %v988_v9 }
 0x850   : > { %v993_v11 = vsub.f32 %v981_v4, %v991_v10 }
 0x851   : > { %v990_v12 = vpop.xlane.xlu1 %989 }
 0x852   : > { %v992_v13 = vmul.f32 0.041666668, %v990_v12  ;;  %v997_v14 = vsel %vm411_vm3, %v993_v11, 0.0 }
 0x853   : > { %v999_v15 = vmul.f32 %v997_v14, %v997_v14 }
 0x854   : > { %v994_v16 = vsub.f32 %v984_v7, %v992_v13 }
 0x855   : > { %1001 = vadd.xlane.f32.xlu0 %v999_v15 }
 0x856   : > { %v998_v18 = vsel %vm411_vm3, %v994_v16, 0.0 }
 0x857   : > { %v1000_v17 = vmul.f32 %v998_v18, %v998_v18 }
 0x859   : > { %1003 = vadd.xlane.f32.xlu1 %v1000_v17 }
 0x8de   : > { %v1002_v19 = vpop.xlane.xlu0 %1001 }
 0x8df   : > { %v1005_v20 = vmul.f32 0.041666668, %v1002_v19 }
 0x8e1   : > { %v1007_v21 = vadd.f32 1e-05, %v1005_v20 }
 0x8e2   : > { %v1004_v22 = vpop.xlane.xlu1 %1003 }
 0x8e3   : > { %1458 = vrsqrt.f32 %v1007_v21  ;;  %v1006_v23 = vmul.f32 0.041666668, %v1004_v22 }
 0x8e5   : > { %v1008_v24 = vadd.f32 1e-05, %v1006_v23 }
 0x8e7   : > { %1460 = vrsqrt.f32 %v1008_v24 }
 0x8f0   : > { %v1459_v25 = vpop.eup %1458 }
 0x8f1   : > { %v1011_v28 = vmul.f32 %v1459_v25, %v997_v14 }
 0x8f3   : > { %v1017_v29 = vmul.f32 %v1016_v27, %v1011_v28 }
 0x8f4   : > { %v1461_v30 = vpop.eup %1460 }
 0x8f5   : > { %v1023_v31 = vadd.f32 %v1022_v26, %v1017_v29  ;;  %v1012_v32 = vmul.f32 %v1461_v30, %v998_v18 }
 0x8f7   : > { %v1018_v33 = vmul.f32 %v1016_v27, %v1012_v32  ;;  %1025 = vst [vmem:[%s406_s26] sm:$0xff] %v1023_v31 }
 0x8f9   : > { %v1024_v52 = vadd.f32 %v1022_v26, %v1018_v33 }
 0x8fb   : > { %1026 = vst [vmem:[%s406_s26 + $0x8] sm:$0xff] %v1024_v52 }
 0x8fc   : > { %1609 = shalt.err (!%p1606_p6)
}
 0x8fd   : > { %s1610_s13 = scalar_lea.hbm %s2033_s15, 256  ;;  %s1614_s2 = scalar_lea.hbm %s2086_s8, 512 }
 0x8fe   : > { %p1611_p7 = scmp.ne.s32.totalorder %s2033_s15, %s1610_s13  ;;  %p1615_p11 = scmp.lt.s32.totalorder %s2033_s15, %s2086_s8 }
 0x8ff   : > { %p1616_p3 = scmp.lt.s32.totalorder %s1614_s2, %s1610_s13 }
 0x900   : > { %p1612_p5 = pnand %p1611_p7, %p2121_p13 }
 0x901   : > { %p1617_p12 = por %p1616_p3, %p1615_p11 }
 0x902   : > { %p1613_p8 = pneg %p1612_p5 }
 0x904   : > { %p1618_p9 = pnand %p1617_p12, %p1613_p8 }
 0x906   : > { %1621 = shalt.err (!%p1618_p9)
}
 0x907   : > { %s1684_s19 = smov 128   ;;  %s1685_s22 = smov 8  }
 0x908   : > { %1350 = dma.vmem_to_hbm [thread:$0]  (%p2121_p13), %s2035_s20, 256, %s2033_s15, %s1028_s18, %s1684_s19, %s1684_s19, %s1685_s22  }
 0x909 PF: > { %s1056_s3 = sand.u32 1, %s1660_s27   ;;  %p2122_p0 = scmp.ne.s32.totalorder %s2103_s12, 0 }
 0x90a   : > { %p2123_p2 = scmp.ge.s32.totalorder %s1672_s30, 2  ;;  %s1057_s23 = scalar_lea.sflag [#allocation4], %s1056_s3 }
 0x90c   : > { %p1370_p10 = pnand %p2123_p2, %p2122_p0 }
 0x90e   : > { %p1371_p1 = pneg %p1370_p10 }
 0x910   : > { %1655 = dma.done.wait (%p1371_p1), %s1057_s23, 256  }
 0x911   : > { %1657 = vsyncadd (%p1371_p1), %s1057_s23, 4294967040  ;;  %s2124_s30 = sld [smem:[#allocation18_spill]]  ;;  %s2127_s27 = smov %s1664_s28 }
 0x912   : > { %s2125_s26 = sld [smem:[#allocation17_spill]] }
 0x913   : > { %s2126_s29 = sld [smem:[#allocation19_spill]] }
 0x917   : > { %p25_p4 = scmp.ge.s32.totalorder %s2124_s30, 4  }
 0x918   : > { %s2128_s28 = smov %s2125_s26 }
 0x919   :  { %27 = sbr.rel (!%p25_p4) target bundleno = 13 (0xd), region = 122 }
 0x91e   :  { %1062 = vsyncpa [#allocation3], 1 }
 0x91f   :  { %1064 = vsyncpa [#allocation3 + $0x1], 1 }
 0x920   :  { %1065 = vsyncpa [#allocation6], 1 }
 0x921   :  { %1067 = vsyncpa [#allocation6 + $0x1], 1 }
 0x922   :  { %1068 = vsyncpa [#allocation9], 1 }
 0x923   :  { %1069 = vsyncpa [#allocation4], 1 }
 0x924   :  { %1071 = vsyncpa [#allocation4 + $0x1], 1 }

</bundles_post_ra>
